<compile_context>
chip_gen: v5e
topology: v5e:2x2
jax: 0.10.0
libtpu: 0.0.40
codegen_flags: <defaults>
</compile_context>

<pallas_src>
import jax
import jax.numpy as jnp
from jax import lax
from jax.experimental import pallas as pl
from jax.experimental.pallas import tpu as pltpu


# ---------------------------------------------------------------------------
# Hardware query (guarded)
# ---------------------------------------------------------------------------
def _vmem_capacity_bytes():
    try:
        info = pltpu.get_tpu_info()
        cap = getattr(info, "vmem_capacity_bytes", None)
        if cap:
            return int(cap)
    except Exception:
        pass
    return 64 * 1024 * 1024          # conservative fallback (v7x per-TC VMEM)


# ---------------------------------------------------------------------------
# Parameter preparation — done ONCE, outside the forward path.
# ---------------------------------------------------------------------------
def prepare_block_params(weights, biases, weight_dtype=None):
    """weights: (L, F, F) in PyTorch (out_f, in_f) convention; biases: (L, F).

    Returns (w_t, b_r) with:
      * w_t: (L, F_pad, F_pad) in (in_f, out_f) layout, F padded up to a
        multiple of 128 (lane-dense, full MXU columns), optionally cast to
        e.g. bf16 to halve weight HBM traffic when streaming,
      * b_r: (L, 1, F_pad) float32.
    The transpose / pad / cast all happen here, not on every forward.
    """
    L, F, F2 = weights.shape
    assert F == F2, "Block uses square Linear layers"
    F_pad = -(-F // 128) * 128

    w_t = jnp.transpose(weights, (0, 2, 1))                  # (L, in_f, out_f)
    b = biases
    if F_pad != F:
        w_t = jnp.pad(w_t, ((0, 0), (0, F_pad - F), (0, F_pad - F)))
        b = jnp.pad(b, ((0, 0), (0, F_pad - F)))
    if weight_dtype is not None:
        w_t = w_t.astype(weight_dtype)
    b_r = b.reshape(L, 1, F_pad).astype(jnp.float32)
    return w_t, b_r


# ---------------------------------------------------------------------------
# Kernel: one grid step = one batch tile x one chunk of Lc layers.
# Grid = (num_batch_tiles, num_layer_chunks); layer-chunk axis innermost.
# ---------------------------------------------------------------------------
def _block_kernel(x_ref, w_ref, b_ref, o_ref, acc_ref):
    chunk = pl.program_id(1)

    @pl.when(chunk == 0)
    def _():
        acc_ref[...] = x_ref[...].astype(jnp.float32)

    layers_in_chunk = w_ref.shape[0]

    def body(l, acc):
        w = w_ref[l]                          # (F_pad, F_pad), (in_f, out_f)
        b = b_ref[l]                          # (1, F_pad) f32
        return (jnp.dot(acc.astype(w_ref.dtype), w,
                        preferred_element_type=jnp.float32)
                + b)

    acc = lax.fori_loop(0, layers_in_chunk, body, acc_ref[...], unroll=True)
    acc_ref[...] = acc

    @pl.when(chunk == pl.num_programs(1) - 1)
    def _():
        o_ref[...] = acc.astype(o_ref.dtype)


# ---------------------------------------------------------------------------
# Wrapper
# ---------------------------------------------------------------------------
def block_forward(x, w_t, b_r, *, batch_tile=None, layer_chunk=None):
    """x: (B, F); w_t: (L, F_pad, F_pad) from prepare_block_params;
    b_r: (L, 1, F_pad) float32.

    batch_tile / layer_chunk override the automatic VMEM-derived plan.
    """
    B, F = x.shape
    L, F_pad, F_pad2 = w_t.shape
    assert F_pad == F_pad2 and F_pad % 128 == 0 and F <= F_pad
    assert b_r.shape == (L, 1, F_pad)

    x_it = x.dtype.itemsize
    w_it = w_t.dtype.itemsize
    granule = 16 if x_it == 2 else 8          # sublane packing granule

    vmem_cap = _vmem_capacity_bytes()
    budget = int(vmem_cap * 0.75)             # headroom for compiler scratch

    # Per-batch-row VMEM bytes: x tile (2 buf) + out tile (2 buf) + f32 acc.
    row_bytes = 4 * F_pad * x_it + 4 * F_pad

    def chunk_bytes(lc):                      # double-buffered weights+biases
        return 2 * lc * (F_pad * F_pad * w_it + F_pad * 4)

    # --- layer-chunk plan: Lc == L means fully resident (fused) weights -----
    if layer_chunk is not None:
        assert L % layer_chunk == 0, "layer_chunk must divide num_layers"
        Lc = layer_chunk
    else:
        Lc = 1
        for c in range(L, 0, -1):
            if L % c == 0 and chunk_bytes(c) + granule * row_bytes <= budget:
                Lc = c
                break
    num_chunks = L // Lc

    # --- batch-tile plan -----------------------------------------------------
    avail = budget - chunk_bytes(Lc)
    if avail > row_bytes * granule:
        max_tb = (avail // row_bytes) // granule * granule
    else:
        max_tb = granule                      # huge-F case; see TODO at top

    if batch_tile is not None:
        tb = -(-batch_tile // granule) * granule
    else:
        if num_chunks == 1 and B >= 2 * granule:
            target_tiles = 2                  # shard fused path over 2 TCs (v7x)
        else:
            target_tiles = 1                  # streamed: stream weights once
        tb = -(-B // target_tiles)
        tb = -(-tb // granule) * granule
    tb = max(granule, min(tb, max_tb))

    num_bt = -(-B // tb)
    B_pad = num_bt * tb

    # --- zero-pad inputs so every tile is full (lane/sublane dense) ----------
    xp = x
    if B_pad != B or F_pad != F:
        xp = jnp.pad(x, ((0, B_pad - B), (0, F_pad - F)))

    est = tb * row_bytes + chunk_bytes(Lc)
    vmem_limit = int(min(vmem_cap * 0.92,
                         max(32 * 1024 * 1024, 1.25 * est)))

    out = pl.pallas_call(
        _block_kernel,
        out_shape=jax.ShapeDtypeStruct((B_pad, F_pad), x.dtype),
        grid_spec=pltpu.PrefetchScalarGridSpec(
            num_scalar_prefetch=0,
            grid=(num_bt, num_chunks),        # layer-chunk axis innermost
            in_specs=[
                pl.BlockSpec((tb, F_pad), lambda i, c: (i, 0)),          # x
                pl.BlockSpec((Lc, F_pad, F_pad), lambda i, c: (c, 0, 0)),  # W chunk
                pl.BlockSpec((Lc, 1, F_pad), lambda i, c: (c, 0, 0)),      # b chunk
            ],
            out_specs=pl.BlockSpec((tb, F_pad), lambda i, c: (i, 0)),
            scratch_shapes=[pltpu.VMEM((tb, F_pad), jnp.float32)],
        ),
        compiler_params=pltpu.CompilerParams(
            dimension_semantics=("parallel", "arbitrary"),
            vmem_limit_bytes=vmem_limit,
        ),
    )(xp, w_t, b_r)

    if B_pad != B or F_pad != F:
        out = out[:B, :F]
    return out


# ---------------------------------------------------------------------------
# Reference + demo
# ---------------------------------------------------------------------------
def _reference(x, weights, biases, weight_dtype=None):
    """Pure-JAX reference matching the PyTorch nn.Linear chain (and, when
    weight_dtype is given, the kernel's mixed-precision casting)."""
    out = x.astype(jnp.float32)
    for l in range(weights.shape[0]):
        w = weights[l].T
        if weight_dtype is not None:
            w = w.astype(weight_dtype)
            out = out.astype(weight_dtype)
        out = (jnp.dot(out, w, preferred_element_type=jnp.float32)
               + biases[l].astype(jnp.float32))
    return out


def _make_inputs(key, batch, features, layers, x_dtype=jnp.float32):
    kx, kw, kb = jax.random.split(key, 3)
    x = jax.random.normal(kx, (batch, features), dtype=jnp.float32).astype(x_dtype)
    bound = 1.0 / (features ** 0.5)      # PyTorch-style U(-1/sqrt(in), 1/sqrt(in))
    weights = jax.random.uniform(kw, (layers, features, features),
                                 minval=-bound, maxval=bound, dtype=jnp.float32)
    biases = jax.random.uniform(kb, (layers, features),
                                minval=-bound, maxval=bound, dtype=jnp.float32)
    return x, weights, biases


if __name__ == "__main__":
    key = jax.random.PRNGKey(0)
    k1, k2, k3 = jax.random.split(key, 3)

    # --- Test 1: module toy size (B=8, F=32, L=3) -> fused single-chunk path,
    #             F padded to 128 for lane-dense stores / full MXU columns.
    x, W, bvec = _make_inputs(k1, 8, 32, 3)
    w_t, b_r = prepare_block_params(W, bvec)
    out = jax.block_until_ready(block_forward(x, w_t, b_r))
    ref = _reference(x, W, bvec)
    assert out.shape == (8, 32) and out.dtype == x.dtype
    assert jnp.allclose(out, ref, atol=1e-4, rtol=1e-4), "fused path mismatch"

    # --- Test 2: forced layer-chunk streaming (Lc=2) + 2 batch tiles, f32.
    x, W, bvec = _make_inputs(k2, 64, 256, 4)
    w_t, b_r = prepare_block_params(W, bvec)
    out = jax.block_until_ready(
        block_forward(x, w_t, b_r, batch_tile=32, layer_chunk=2))
    ref = _reference(x, W, bvec)
    assert jnp.allclose(out, ref, atol=1e-2, rtol=1e-2), "chunked f32 mismatch"

    # --- Test 3: bf16 weight streaming + bf16 activations (f32 accumulation).
    x, W, bvec = _make_inputs(k3, 64, 256, 4, x_dtype=jnp.bfloat16)
    w_t, b_r = prepare_block_params(W, bvec, weight_dtype=jnp.bfloat16)
    out = jax.block_until_ready(
        block_forward(x, w_t, b_r, batch_tile=32, layer_chunk=2))
    ref = _reference(x, W, bvec, weight_dtype=jnp.bfloat16)
    assert jnp.allclose(out.astype(jnp.float32), ref.astype(jnp.float32),
                        atol=5e-2, rtol=5e-2), "chunked bf16 mismatch"

    print("KERNEL_OK")
</pallas_src>

<mosaic_0001>
module attributes {stable_mosaic.version = 11 : i64} {
  func.func @_block_kernel(%arg0: i32, %arg1: i32, %arg2: memref<8x128xf32, #tpu.memory_space<vmem>>, %arg3: memref<3x128x128xf32, #tpu.memory_space<vmem>>, %arg4: memref<3x1x128xf32, #tpu.memory_space<vmem>>, %arg5: memref<8x128xf32, #tpu.memory_space<vmem>>, %arg6: memref<8x128xf32, #tpu.memory_space<vmem>>) attributes {dimension_semantics = [#tpu.dimension_semantics<parallel>, #tpu.dimension_semantics<arbitrary>], iteration_bounds = array<i64: 1, 1>, scalar_prefetch = 0 : i64, scratch_operands = 1 : i64, tpu.core_type = #tpu.core_type<tc>, window_params = [{transform_indices = @transform_0, window_bounds = array<i64: 8, 128>}, {transform_indices = @transform_1, window_bounds = array<i64: 3, 128, 128>}, {transform_indices = @transform_2, window_bounds = array<i64: 3, 1, 128>}, {transform_indices = @transform_3, window_bounds = array<i64: 8, 128>}]} {
    %c0_i32 = arith.constant 0 : i32
    %0 = arith.cmpi eq, %arg1, %c0_i32 : i32
    %1 = arith.extui %0 : i1 to i32
    %c0_i32_0 = arith.constant 0 : i32
    %2 = arith.cmpi ne, %1, %c0_i32_0 : i32
    scf.if %2 {
      %c0_21 = arith.constant 0 : index
      %c0_22 = arith.constant 0 : index
      %35 = vector.load %arg2[%c0_21, %c0_22] : memref<8x128xf32, #tpu.memory_space<vmem>>, vector<8x128xf32>
      %c0_23 = arith.constant 0 : index
      %c0_24 = arith.constant 0 : index
      %36 = vector.load %arg6[%c0_23, %c0_24] : memref<8x128xf32, #tpu.memory_space<vmem>>, vector<8x128xf32>
      tpu.vector_store %arg6[%c0_23, %c0_24], %35 {strides = array<i32>} : memref<8x128xf32, #tpu.memory_space<vmem>>, vector<8x128xf32>,
    } else {
    }
    %c0 = arith.constant 0 : index
    %c0_1 = arith.constant 0 : index
    %3 = vector.load %arg6[%c0, %c0_1] : memref<8x128xf32, #tpu.memory_space<vmem>>, vector<8x128xf32>
    %c0_i32_2 = arith.constant 0 : i32
    %4 = arith.index_cast %c0_i32_2 : i32 to index
    %c0_3 = arith.constant 0 : index
    %c0_4 = arith.constant 0 : index
    %5 = vector.load %arg3[%4, %c0_3, %c0_4] : memref<3x128x128xf32, #tpu.memory_space<vmem>>, vector<1x128x128xf32>
    %6 = vector.shape_cast %5 : vector<1x128x128xf32> to vector<128x128xf32>
    %7 = arith.index_cast %c0_i32_2 : i32 to index
    %c0_5 = arith.constant 0 : index
    %c0_6 = arith.constant 0 : index
    %8 = vector.load %arg4[%7, %c0_5, %c0_6] : memref<3x1x128xf32, #tpu.memory_space<vmem>>, vector<1x1x128xf32>
    %9 = vector.shape_cast %8 : vector<1x1x128xf32> to vector<1x128xf32>
    %cst = arith.constant dense<0.000000e+00> : vector<8x128xf32>
    %10 = tpu.matmul %3, %6, %cst {dimension_numbers = #tpu.dot_dimension_numbers<[1], [0], [0], [1], [0, 0, 1, 1], [], []>} : vector<8x128xf32>, vector<128x128xf32>, vector<8x128xf32> -> vector<8x128xf32>
    %11 = vector.broadcast %9 : vector<1x128xf32> to vector<8x128xf32>
    %12 = arith.addf %10, %11 : vector<8x128xf32>
    %c1_i32 = arith.constant 1 : i32
    %13 = arith.index_cast %c1_i32 : i32 to index
    %c0_7 = arith.constant 0 : index
    %c0_8 = arith.constant 0 : index
    %14 = vector.load %arg3[%13, %c0_7, %c0_8] : memref<3x128x128xf32, #tpu.memory_space<vmem>>, vector<1x128x128xf32>
    %15 = vector.shape_cast %14 : vector<1x128x128xf32> to vector<128x128xf32>
    %16 = arith.index_cast %c1_i32 : i32 to index
    %c0_9 = arith.constant 0 : index
    %c0_10 = arith.constant 0 : index
    %17 = vector.load %arg4[%16, %c0_9, %c0_10] : memref<3x1x128xf32, #tpu.memory_space<vmem>>, vector<1x1x128xf32>
    %18 = vector.shape_cast %17 : vector<1x1x128xf32> to vector<1x128xf32>
    %cst_11 = arith.constant dense<0.000000e+00> : vector<8x128xf32>
    %19 = tpu.matmul %12, %15, %cst_11 {dimension_numbers = #tpu.dot_dimension_numbers<[1], [0], [0], [1], [0, 0, 1, 1], [], []>} : vector<8x128xf32>, vector<128x128xf32>, vector<8x128xf32> -> vector<8x128xf32>
    %20 = vector.broadcast %18 : vector<1x128xf32> to vector<8x128xf32>
    %21 = arith.addf %19, %20 : vector<8x128xf32>
    %c2_i32 = arith.constant 2 : i32
    %22 = arith.index_cast %c2_i32 : i32 to index
    %c0_12 = arith.constant 0 : index
    %c0_13 = arith.constant 0 : index
    %23 = vector.load %arg3[%22, %c0_12, %c0_13] : memref<3x128x128xf32, #tpu.memory_space<vmem>>, vector<1x128x128xf32>
    %24 = vector.shape_cast %23 : vector<1x128x128xf32> to vector<128x128xf32>
    %25 = arith.index_cast %c2_i32 : i32 to index
    %c0_14 = arith.constant 0 : index
    %c0_15 = arith.constant 0 : index
    %26 = vector.load %arg4[%25, %c0_14, %c0_15] : memref<3x1x128xf32, #tpu.memory_space<vmem>>, vector<1x1x128xf32>
    %27 = vector.shape_cast %26 : vector<1x1x128xf32> to vector<1x128xf32>
    %cst_16 = arith.constant dense<0.000000e+00> : vector<8x128xf32>
    %28 = tpu.matmul %21, %24, %cst_16 {dimension_numbers = #tpu.dot_dimension_numbers<[1], [0], [0], [1], [0, 0, 1, 1], [], []>} : vector<8x128xf32>, vector<128x128xf32>, vector<8x128xf32> -> vector<8x128xf32>
    %29 = vector.broadcast %27 : vector<1x128xf32> to vector<8x128xf32>
    %30 = arith.addf %28, %29 : vector<8x128xf32>
    %c3_i32 = arith.constant 3 : i32
    %c0_17 = arith.constant 0 : index
    %c0_18 = arith.constant 0 : index
    %31 = vector.load %arg6[%c0_17, %c0_18] : memref<8x128xf32, #tpu.memory_space<vmem>>, vector<8x128xf32>
    tpu.vector_store %arg6[%c0_17, %c0_18], %30 {strides = array<i32>} : memref<8x128xf32, #tpu.memory_space<vmem>>, vector<8x128xf32>,
    %c0_i32_19 = arith.constant 0 : i32
    %32 = arith.cmpi eq, %arg1, %c0_i32_19 : i32
    %33 = arith.extui %32 : i1 to i32
    %c0_i32_20 = arith.constant 0 : i32
    %34 = arith.cmpi ne, %33, %c0_i32_20 : i32
    scf.if %34 {
      %c0_21 = arith.constant 0 : index
      %c0_22 = arith.constant 0 : index
      %35 = vector.load %arg5[%c0_21, %c0_22] : memref<8x128xf32, #tpu.memory_space<vmem>>, vector<8x128xf32>
      tpu.vector_store %arg5[%c0_21, %c0_22], %30 {strides = array<i32>} : memref<8x128xf32, #tpu.memory_space<vmem>>, vector<8x128xf32>,
    } else {
    }
    return
  }
  func.func @transform_0(%arg0: i32, %arg1: i32) -> (i32, i32) {
    %c0_i32 = arith.constant 0 : i32
    %c0_i32_0 = arith.constant 0 : i32
    return %arg0, %c0_i32 : i32, i32
  }
  func.func @transform_1(%arg0: i32, %arg1: i32) -> (i32, i32, i32) {
    %c0_i32 = arith.constant 0 : i32
    %c0_i32_0 = arith.constant 0 : i32
    %c0_i32_1 = arith.constant 0 : i32
    return %arg1, %c0_i32, %c0_i32_0 : i32, i32, i32
  }
  func.func @transform_2(%arg0: i32, %arg1: i32) -> (i32, i32, i32) {
    %c0_i32 = arith.constant 0 : i32
    %c0_i32_0 = arith.constant 0 : i32
    %c0_i32_1 = arith.constant 0 : i32
    return %arg1, %c0_i32, %c0_i32_0 : i32, i32, i32
  }
  func.func @transform_3(%arg0: i32, %arg1: i32) -> (i32, i32) {
    %c0_i32 = arith.constant 0 : i32
    %c0_i32_0 = arith.constant 0 : i32
    return %arg0, %c0_i32 : i32, i32
  }
}

</mosaic_0001>

<bundles_post_ra>
// kernel: tpu_custom_call.1
= control target key start
LH: loop header
LB: loop body
LE: loop exit
PB: predicated region body
PF: predicated region fallthrough
CT: control target
= control target key end

     0   :  { %8 = vsyncpa [#allocation4], 0  ;;  %s367_s0 = inlined_call_operand.hbm [shape: f32[8,128], index: 0, kind: input, shape index: {}]   ;;  %s368_s1 = inlined_call_operand.hbm [shape: f32[3,128,128], index: 1, kind: input, shape index: {}]   ;;  %s369_s2 = inlined_call_operand.hbm [shape: f32[3,1,128], index: 2, kind: input, shape index: {}]   ;;  %s370_s3 = inlined_call_operand.hbm [shape: f32[8,128], index: 3, kind: output, shape index: {}]  }
   0x1   :  { %9 = vsyncpa [#allocation7], 0  ;;  %s26_s14 = sshll.u32 %s368_s1, 4  ;;  %s27_s14 = int_to_ptr.hbm [resolvable:$true] %s26_s14 }
   0x2   :  { %10 = vsyncpa [#allocation5], 0  ;;  %s327_s15 = smov [#allocation6]   ;;  %s16_s19 = sshll.u32 %s367_s0, 4  ;;  %s17_s19 = int_to_ptr.hbm [resolvable:$true] %s16_s19 }
   0x3   :  { %s28_s16 = sshll.u32 %s327_s15, 4  ;;  %s328_s20 = smov 128   ;;  %s29_s16 = int_to_ptr.vmem [resolvable:$true] %s28_s16 }
   0x4   :  { %s329_s21 = smov 8   ;;  %s330_s22 = smov [#allocation3]  }
   0x5   :  { %34 = dma.hbm_to_vmem [thread:$0]  %s27_s14, 6144, %s29_s16, [#allocation7], %s328_s20, %s328_s20, %s329_s21  }
   0x6   :  { %s18_s23 = sshll.u32 %s330_s22, 4  ;;  %s39_s26 = sshll.u32 %s369_s2, 4  ;;  %s19_s23 = int_to_ptr.vmem [resolvable:$true] %s18_s23  ;;  %s40_s26 = int_to_ptr.hbm [resolvable:$true] %s39_s26 }
   0x7   :  { %21 = dma.hbm_to_vmem [thread:$0]  %s17_s19, 128, %s19_s23, [#allocation4]  }
   0x8   :  { %s331_s1 = smov [#allocation8]   ;;  %s332_s28 = smov 16  }
   0x9   :  { %s41_s27 = sshll.u32 %s331_s1, 4  ;;  %s333_s29 = smov 1   ;;  %s42_s27 = int_to_ptr.vmem [resolvable:$true] %s41_s27 }
   0xa   :  { %47 = dma.hbm_to_vmem [thread:$0]  %s40_s26, 48, %s42_s27, [#allocation7], %s332_s28, %s332_s28, %s333_s29  }
   0xb   :  { %321 = dma.done.wait [#allocation4], 128  }
   0xc   :  { %322 = vsyncadd [#allocation4], 4294967168 }
   0xd   :  { %323 = dma.done.wait [#allocation7], 6192  }
   0xe   :  { %324 = vsyncadd [#allocation7], 4294961104  ;;  %v82_v0 = vld [vmem:[#allocation6 + $0x78] sm:$0xff]  ;;  %v81_v1 = vld [vmem:[#allocation6 + $0x70] sm:$0xff]  ;;  %s334_s0 = smov [#allocation9]   ;;  %s203_s5 = sshll.u32 %s370_s3, 4  ;;  %s204_s5 = int_to_ptr.hbm [resolvable:$true] %s203_s5 }
   0xf   :  { %87 = vmatpush.msra.mxu0 %v82_v0  ;;  %v80_v2 = vld [vmem:[#allocation6 + $0x68] sm:$0xff]  ;;  %v79_v3 = vld [vmem:[#allocation6 + $0x60] sm:$0xff]  ;;  %v123_v4 = vld [vmem:[#allocation6 + $0xf8] sm:$0xff]  ;;  %s201_s2 = sshll.u32 %s334_s0, 4  ;;  %s202_s2 = int_to_ptr.vmem [resolvable:$true] %s201_s2 }
  0x10   :  { %v78_v5 = vld [vmem:[#allocation6 + $0x58] sm:$0xff]  ;;  %129 = vmatpush.msra.mxu1 %v123_v4  ;;  %v122_v6 = vld [vmem:[#allocation6 + $0xf0] sm:$0xff]  ;;  %v121_v7 = vld [vmem:[#allocation6 + $0xe8] sm:$0xff] }
  0x11   :  { %88 = vmatpush.msra.mxu0 %v81_v1  ;;  %v77_v8 = vld [vmem:[#allocation6 + $0x50] sm:$0xff]  ;;  %v120_v9 = vld [vmem:[#allocation6 + $0xe0] sm:$0xff]  ;;  %v76_v10 = vld [vmem:[#allocation6 + $0x48] sm:$0xff] }
  0x12   :  { %130 = vmatpush.msra.mxu1 %v122_v6  ;;  %v119_v11 = vld [vmem:[#allocation6 + $0xd8] sm:$0xff]  ;;  %v75_v12 = vld [vmem:[#allocation6 + $0x40] sm:$0xff]  ;;  %v118_v13 = vld [vmem:[#allocation6 + $0xd0] sm:$0xff] }
  0x13   :  { %89 = vmatpush.msra.mxu0 %v80_v2  ;;  %v74_v14 = vld [vmem:[#allocation6 + $0x38] sm:$0xff]  ;;  %v117_v15 = vld [vmem:[#allocation6 + $0xc8] sm:$0xff]  ;;  %v73_v16 = vld [vmem:[#allocation6 + $0x30] sm:$0xff] }
  0x14   :  { %131 = vmatpush.msra.mxu1 %v121_v7  ;;  %v116_v17 = vld [vmem:[#allocation6 + $0xc0] sm:$0xff]  ;;  %v72_v18 = vld [vmem:[#allocation6 + $0x28] sm:$0xff]  ;;  %v115_v19 = vld [vmem:[#allocation6 + $0xb8] sm:$0xff] }
  0x15   :  { %90 = vmatpush.msra.mxu0 %v79_v3  ;;  %v71_v20 = vld [vmem:[#allocation6 + $0x20] sm:$0xff]  ;;  %v114_v21 = vld [vmem:[#allocation6 + $0xb0] sm:$0xff]  ;;  %v70_v22 = vld [vmem:[#allocation6 + $0x18] sm:$0xff] }
  0x16   :  { %132 = vmatpush.msra.mxu1 %v120_v9  ;;  %v113_v23 = vld [vmem:[#allocation6 + $0xa8] sm:$0xff]  ;;  %v69_v24 = vld [vmem:[#allocation6 + $0x10] sm:$0xff]  ;;  %v112_v25 = vld [vmem:[#allocation6 + $0xa0] sm:$0xff] }
  0x17   :  { %91 = vmatpush.msra.mxu0 %v78_v5  ;;  %v68_v26 = vld [vmem:[#allocation6 + $0x8] sm:$0xff]  ;;  %v111_v27 = vld [vmem:[#allocation6 + $0x98] sm:$0xff]  ;;  %v67_v28 = vld [vmem:[#allocation6] sm:$0xff] }
  0x18   :  { %133 = vmatpush.msra.mxu1 %v119_v11  ;;  %v64_v29 = vld [vmem:[#allocation3] sm:$0xff]  ;;  %v110_v30 = vld [vmem:[#allocation6 + $0x90] sm:$0xff]  ;;  %v109_v31 = vld [vmem:[#allocation6 + $0x88] sm:$0xff] }
  0x19   :  { %92 = vmatpush.msra.mxu0 %v77_v8  ;;  %v108_v32 = vld [vmem:[#allocation6 + $0x80] sm:$0xff]  ;;  %v165_v33 = vld [vmem:[#allocation6 + $0x178] sm:$0xff]  ;;  %v164_v34 = vld [vmem:[#allocation6 + $0x170] sm:$0xff] }
  0x1a   :  { %134 = vmatpush.msra.mxu1 %v118_v13  ;;  %171 = vmatpush.msra.mxu2 %v165_v33  ;;  %v163_v35 = vld [vmem:[#allocation6 + $0x168] sm:$0xff]  ;;  %v162_v36 = vld [vmem:[#allocation6 + $0x160] sm:$0xff]  ;;  %v161_v37 = vld [vmem:[#allocation6 + $0x158] sm:$0xff] }
  0x1b   :  { %93 = vmatpush.msra.mxu0 %v76_v10  ;;  %v160_v38 = vld [vmem:[#allocation6 + $0x150] sm:$0xff]  ;;  %v159_v39 = vld [vmem:[#allocation6 + $0x148] sm:$0xff]  ;;  %v158_v40 = vld [vmem:[#allocation6 + $0x140] sm:$0xff] }
  0x1c   :  { %135 = vmatpush.msra.mxu1 %v117_v15  ;;  %172 = vmatpush.msra.mxu2 %v164_v34  ;;  %v157_v41 = vld [vmem:[#allocation6 + $0x138] sm:$0xff]  ;;  %v156_v42 = vld [vmem:[#allocation6 + $0x130] sm:$0xff]  ;;  %v155_v43 = vld [vmem:[#allocation6 + $0x128] sm:$0xff] }
  0x1d   :  { %94 = vmatpush.msra.mxu0 %v75_v12  ;;  %v154_v44 = vld [vmem:[#allocation6 + $0x120] sm:$0xff]  ;;  %v153_v45 = vld [vmem:[#allocation6 + $0x118] sm:$0xff]  ;;  %v152_v46 = vld [vmem:[#allocation6 + $0x110] sm:$0xff] }
  0x1e   :  { %136 = vmatpush.msra.mxu1 %v116_v17  ;;  %173 = vmatpush.msra.mxu2 %v163_v35  ;;  %v222_v47 = vld [vmem:[#allocation8] ss:$0 sm:$0xff]  ;;  %v151_v50 = vld [vmem:[#allocation6 + $0x108] sm:$0xff]  ;;  %v223_v52 = vld [vmem:[#allocation8 + $0x1] ss:$0 sm:$0xff] }
  0x1f   :  { %95 = vmatpush.msra.mxu0 %v74_v14  ;;  %v150_v51 = vld [vmem:[#allocation6 + $0x100] sm:$0xff] }
  0x20   :  { %137 = vmatpush.msra.mxu1 %v115_v19  ;;  %174 = vmatpush.msra.mxu2 %v162_v36  ;;  %v224_v55 = vld [vmem:[#allocation8 + $0x2] ss:$0 sm:$0xff] }
  0x21   :  { %96 = vmatpush.msra.mxu0 %v73_v16 }
  0x22   :  { %138 = vmatpush.msra.mxu1 %v114_v21  ;;  %175 = vmatpush.msra.mxu2 %v161_v37 }
  0x23   :  { %97 = vmatpush.msra.mxu0 %v72_v18 }
  0x24   :  { %139 = vmatpush.msra.mxu1 %v113_v23  ;;  %176 = vmatpush.msra.mxu2 %v160_v38 }
  0x25   :  { %98 = vmatpush.msra.mxu0 %v71_v20 }
  0x26   :  { %140 = vmatpush.msra.mxu1 %v112_v25  ;;  %177 = vmatpush.msra.mxu2 %v159_v39 }
  0x27   :  { %99 = vmatpush.msra.mxu0 %v70_v22 }
  0x28   :  { %141 = vmatpush.msra.mxu1 %v111_v27  ;;  %178 = vmatpush.msra.mxu2 %v158_v40 }
  0x29   :  { %100 = vmatpush.msra.mxu0 %v69_v24 }
  0x2a   :  { %142 = vmatpush.msra.mxu1 %v110_v30  ;;  %179 = vmatpush.msra.mxu2 %v157_v41 }
  0x2b   :  { %101 = vmatpush.msra.mxu0 %v68_v26 }
  0x2c   :  { %143 = vmatpush.msra.mxu1 %v109_v31  ;;  %180 = vmatpush.msra.mxu2 %v156_v42 }
  0x2d   :  { %102 = vmatpush.msra.mxu0 %v67_v28 }
  0x2e   :  { %103 = vmatmul.f32.vlgmr.msra.gmra.mxu0 %v64_v29  ;;  %144 = vmatpush.msra.mxu1 %v108_v32 }
  0x2f   :  { %181 = vmatpush.msra.mxu2 %v155_v43 }
  0x31   :  { %182 = vmatpush.msra.mxu2 %v154_v44 }
  0x33   :  { %183 = vmatpush.msra.mxu2 %v153_v45 }
  0x35   :  { %184 = vmatpush.msra.mxu2 %v152_v46 }
  0x37   :  { %185 = vmatpush.msra.mxu2 %v151_v50 }
  0x39   :  { %186 = vmatpush.msra.mxu2 %v150_v51 }
  0xab   :  { %v104_v48 = vpop.f32.mrf.mxu0 }
  0xac   :  { %v105_v49 = vadd.f32 %v222_v47, %v104_v48 }
  0xae   :  { %145 = vmatmul.f32.vlgmr.msra.gmra.mxu1 %v105_v49 }
 0x12b   :  { %v146_v53 = vpop.f32.mrf.mxu1 }
 0x12c   :  { %v147_v54 = vadd.f32 %v223_v52, %v146_v53 }
 0x12e   :  { %187 = vmatmul.f32.vlgmr.msra.gmra.mxu2 %v147_v54 }
 0x1b1   :  { %v188_v56 = vpop.f32.mrf.mxu2 }
 0x1b2   :  { %v189_v57 = vadd.f32 %v224_v55, %v188_v56 }
 0x1b4   :  { %195 = vst [vmem:[#allocation9] sm:$0xff] %v189_v57 }
 0x1b5   :  { %206 = dma.vmem_to_hbm [thread:$0]  %s202_s2, 128, %s204_s5, [#allocation5]  }
 0x1b6   :  { %325 = dma.done.wait [#allocation5], 128  }
 0x1b7   :  { %326 = vsyncadd [#allocation5], 4294967168 }
 0x1b8   :  { %211 = vsyncpa [#allocation4], 1 }
 0x1b9   :  { %212 = vsyncpa [#allocation7], 1 }
 0x1ba   :  { %213 = vsyncpa [#allocation5], 1 }

</bundles_post_ra>
